<compile_context>
chip_gen: v7x
topology: tpu7x:2x2x1
jax: 0.10.0
libtpu: 0.0.40
codegen_flags: <defaults>
</compile_context>

<pallas_src>
import functools

import jax
import jax.numpy as jnp
from jax.experimental import pallas as pl
from jax.experimental.pallas import tpu as pltpu


def _round_up(x, m):
    return (x + m - 1) // m * m


def _device_kind():
    try:
        return jax.devices()[0].device_kind.lower()
    except Exception:
        return ""


def _default_vmem_limit_bytes():
    # ~3/4 of physical per-core VMEM, capped at 100 MiB:
    #   v5e/v6e (128 MiB physical) -> 96 MiB;  v7x (64 MiB physical) -> 48 MiB.
    try:
        cap = int(pltpu.get_tpu_info().vmem_capacity_bytes)
    except Exception:
        cap = 64 * 1024 * 1024
    return min(100 * 1024 * 1024, (cap * 3) // 4)


# ---------------------------------------------------------------------------
# Kernel A: dense layer + LeakyReLU #1 + fused per-head attention logits
# ---------------------------------------------------------------------------
def prep_kernel(feat_ref, w_ref, b_ref, watt_ref, h_ref, e_ref, *, negative_slope):
    # Dense layer: bf16 operands (pre-cast once in the wrapper -> no per-step casts
    # of the resident weight), f32 accumulation on the MXU.
    h = jnp.dot(feat_ref[...], w_ref[...], preferred_element_type=jnp.float32)  # [TM, HD]
    h = h + b_ref[...]
    # LeakyReLU #1 (valid for 0 < negative_slope < 1): mul + max instead of cmp+mul+select.
    h = jnp.maximum(h, negative_slope * h)
    # h stored in bf16: halves HBM writeback and Kernel B's resident VMEM footprint.
    h_ref[...] = h.astype(h_ref.dtype)
    # Fused logits e = [e_src | e_dst] via one block-structured [HD, 2H] RHS, computed
    # from the f32 accumulator (tiny matmul; avoids any [N, H, D] reshape and halves
    # the number of narrow MXU pushes / masked partial stores vs. two [TM, H] outputs).
    e_ref[...] = jnp.dot(h, watt_ref[...], preferred_element_type=jnp.float32)


# ---------------------------------------------------------------------------
# Kernel B: per-dst-row-tile edge softmax * dist + attention-weighted aggregation
# ---------------------------------------------------------------------------
def attn_kernel(edst_ref, esrct_ref, h_ref, adj_ref, dist_ref, out_ref,
                *, num_heads, out_dim, negative_slope, ew_dtype):
    H, D = num_heads, out_dim
    neg_big = jnp.float32(-1e30)

    # Non-edge mask bias, hoisted once per tile (head-invariant).  Compare on the
    # streamed dtype directly (no f32 upcast of adj); the post-exp `* adj` is dropped
    # because exp(-1e30 - m) underflows to exactly 0 given the >=1-incoming-edge rule.
    bias = jnp.where(adj_ref[...] > 0, jnp.float32(0.0), neg_big)      # [TM, Np]

    edst = edst_ref[...]           # [TM, H]  f32
    esrct = esrct_ref[...]         # [H, Np]  f32 -- lane-major row per head

    # H is small -> static unroll.
    outs = []
    for head in range(H):
        # e[i, j] = e_dst[i] + e_src[j]  (edge j -> i).  e_src is lane-major, so the
        # [1, Np] -> [TM, Np] sublane broadcast is nearly free (no XLU relayout).
        e = edst[:, head:head + 1] + esrct[head:head + 1, :]            # [TM, Np]
        e = jnp.maximum(e, negative_slope * e)                          # LeakyReLU #2
        masked = e + bias

        # edge_softmax with the normalization deferred past the aggregation matmul
        # (mathematically identical: denominator excludes dist, max shift cancels).
        m = jnp.max(masked, axis=1, keepdims=True)                      # [TM, 1]
        p = jnp.exp((masked - m).astype(ew_dtype))                      # bf16 EUP on v6e/v7x
        denom = jnp.sum(p.astype(jnp.float32), axis=1, keepdims=True)   # f32 denominator
        denom = jnp.maximum(denom, jnp.float32(1e-30))                  # guard padded rows

        # multiply by per-edge distance weight, then aggregate:
        #   update_all(u_mul_e, sum) == (p * dist) @ h[:, head*D:(head+1)*D]
        q = p * dist_ref[head].astype(ew_dtype)                         # [TM, Np]
        out_h = jnp.dot(q.astype(jnp.bfloat16),
                        h_ref[:, head * D:(head + 1) * D],              # bf16 ref slice
                        preferred_element_type=jnp.float32)             # [TM, D]
        # deferred normalization: runs on [TM, D] instead of [TM, Np]
        out_h = out_h * pl.reciprocal(denom, approx=True)               # EUP divide
        outs.append(out_h)

    # single full-width (lane-dense) store of all heads
    out_ref[...] = jnp.concatenate(outs, axis=1).astype(out_ref.dtype)


# ---------------------------------------------------------------------------
# Wrapper
# ---------------------------------------------------------------------------
def gat_layer(feat, W, b, w_src, w_dst, adj, dist, *, num_heads, out_dim,
              negative_slope=0.2, tile_m=128, bf16_elementwise=None,
              vmem_limit_bytes=None):
    N, in_dim = feat.shape
    H, D = num_heads, out_dim
    HD = H * D
    assert W.shape == (in_dim, HD) and b.shape == (1, HD)
    assert w_src.shape == (H, D) and w_dst.shape == (H, D)
    assert adj.shape == (N, N) and dist.shape == (H, N, N)
    assert 0.0 < negative_slope < 1.0

    # ---- per-generation dtype / VMEM policy ----
    kind = _device_kind()
    if bf16_elementwise is None:
        # v6e / v7x have bf16 VPU & EUP paths (the dense exp is the single-slot EUP
        # bottleneck); v5e and older keep the softmax elementwise math in f32.
        bf16_elementwise = any(t in kind for t in ("v6", "v7", "tpu7"))
    ew_dtype = jnp.bfloat16 if bf16_elementwise else jnp.float32
    if vmem_limit_bytes is None:
        vmem_limit_bytes = _default_vmem_limit_bytes()

    # ---- destination-row tile selection (pad N up to a multiple of TM) ----
    tile_m = max(8, _round_up(tile_m, 8))
    TM = min(tile_m, _round_up(N, 8))

    dist_bytes = jnp.dtype(dist.dtype).itemsize
    adj_bytes = jnp.dtype(adj.dtype).itemsize

    def kernel_b_vmem(tm):
        np_ = _round_up(N, tm)
        streamed = 2 * tm * (H * np_ * dist_bytes + np_ * adj_bytes + H * 4 + HD * 4)
        resident = 2 * (np_ * HD * 2 + H * np_ * 4)     # h (bf16) + e_src^T, double-buffered
        return streamed + resident

    # Shrink TM until the double-buffered dist/adj stream + resident h / e_src^T fit
    # the per-generation VMEM budget (matters on v7x's 64 MiB for large crystals).
    while TM > 8 and kernel_b_vmem(TM) > vmem_limit_bytes - (4 << 20):
        TM = max(8, _round_up(TM // 2, 8))
    # TODO(synk): for very large N (Np-wide tiles no longer fit even at TM=8), add a
    # second "arbitrary" grid axis over the source dimension with a flash-style online
    # softmax (running max / denom / accumulator in VMEM scratch) so per-step VMEM is
    # independent of N, and switch the dense [N, N] adjacency to a CSR / neighbor-list
    # formulation with pltpu.PrefetchScalarGridSpec so only real edges are streamed.
    # TODO(synk): mark the resident Kernel-B inputs (e_src^T, h) with
    # pipeline_mode=pl.Buffered(1) once single-buffered residents are supported by the
    # installed Pallas version (halves their VMEM footprint).

    Np = _round_up(N, TM)
    if Np != N:
        pad = Np - N
        feat = jnp.pad(feat, ((0, pad), (0, 0)))
        adj = jnp.pad(adj, ((0, pad), (0, pad)))
        dist = jnp.pad(dist, ((0, 0), (0, pad), (0, pad)))

    # ---- weights prepared ONCE (no per-grid-step casts inside the kernels) ----
    feat_bf = feat.astype(jnp.bfloat16)
    W_bf = W.astype(jnp.bfloat16)
    # Block-structured fused attention RHS:
    #   (h @ watt)[n, g]     = sum_d h[n, g*D+d] * w_src[g, d]   (e_src)
    #   (h @ watt)[n, H + g] = sum_d h[n, g*D+d] * w_dst[g, d]   (e_dst)
    eye = jnp.eye(H, dtype=jnp.float32)
    wsrc_blk = (w_src.astype(jnp.float32)[:, :, None] * eye[:, None, :]).reshape(HD, H)
    wdst_blk = (w_dst.astype(jnp.float32)[:, :, None] * eye[:, None, :]).reshape(HD, H)
    watt = jnp.concatenate([wsrc_blk, wdst_blk], axis=1)               # [HD, 2H]

    grid = (Np // TM,)
    cparams = pltpu.CompilerParams(
        dimension_semantics=("parallel",),            # megacore-shardable dst axis
        vmem_limit_bytes=int(vmem_limit_bytes))

    # ---- Kernel A: h (bf16), e = [e_src | e_dst] ----
    h_bf, e = pl.pallas_call(
        functools.partial(prep_kernel, negative_slope=negative_slope),
        out_shape=(jax.ShapeDtypeStruct((Np, HD), jnp.bfloat16),
                   jax.ShapeDtypeStruct((Np, 2 * H), jnp.float32)),
        grid=grid,
        in_specs=[
            pl.BlockSpec((TM, in_dim), lambda i: (i, 0)),
            pl.BlockSpec((in_dim, HD), lambda i: (0, 0)),
            pl.BlockSpec((1, HD), lambda i: (0, 0)),
            pl.BlockSpec((HD, 2 * H), lambda i: (0, 0)),
        ],
        out_specs=(pl.BlockSpec((TM, HD), lambda i: (i, 0)),
                   pl.BlockSpec((TM, 2 * H), lambda i: (i, 0))),
        compiler_params=cparams,
    )(feat_bf, W_bf, b.astype(jnp.float32), watt)

    # e_src transposed to [H, Np] so Kernel B reads a lane-major row per head
    # (avoids a per-head sublane->lane XLU relayout of Np elements every grid step).
    e_src_t = e[:, :H].T
    e_dst = e[:, H:]

    # ---- Kernel B: attention + aggregation, tiled over destination rows ----
    def run_attn(dtype):
        return pl.pallas_call(
            functools.partial(attn_kernel, num_heads=H, out_dim=D,
                              negative_slope=negative_slope, ew_dtype=dtype),
            out_shape=jax.ShapeDtypeStruct((Np, HD), jnp.float32),
            grid=grid,
            in_specs=[
                pl.BlockSpec((TM, H), lambda i: (i, 0)),          # e_dst   (row tile)
                pl.BlockSpec((H, Np), lambda i: (0, 0)),          # e_src^T (resident)
                pl.BlockSpec((Np, HD), lambda i: (0, 0)),         # h bf16  (resident)
                pl.BlockSpec((TM, Np), lambda i: (i, 0)),         # adj     (row tile, caller dtype)
                pl.BlockSpec((H, TM, Np), lambda i: (0, i, 0)),   # dist    (row tile, caller dtype)
            ],
            out_specs=pl.BlockSpec((TM, HD), lambda i: (i, 0)),
            compiler_params=cparams,
        )(e_dst, e_src_t, h_bf, adj, dist)

    try:
        out = run_attn(ew_dtype)
    except Exception:
        if ew_dtype == jnp.float32:
            raise
        # Dtype-policy fallback: keep softmax elementwise math in f32 if this target
        # rejects bf16 elementwise lowering.
        out = run_attn(jnp.float32)

    return out[:N]


# ---------------------------------------------------------------------------
# Pure-JAX f32 reference reproducing the torch forward on a dense graph
# ---------------------------------------------------------------------------
def reference(feat, W, b, w_src, w_dst, adj, dist, negative_slope=0.2):
    N = feat.shape[0]
    H, D = w_src.shape
    h = feat @ W + b
    h = jnp.where(h >= 0, h, negative_slope * h)
    hf = h.reshape(N, H, D)
    e_src = jnp.sum(hf * w_src[None], axis=-1)              # [N, H]
    e_dst = jnp.sum(hf * w_dst[None], axis=-1)               # [N, H]
    e = e_dst[:, None, :] + e_src[None, :, :]                 # [Ndst, Nsrc, H]
    e = jnp.where(e >= 0, e, negative_slope * e)
    masked = jnp.where(adj[:, :, None] > 0, e, -1e30)
    m = masked.max(axis=1, keepdims=True)
    p = jnp.exp(masked - m) * adj[:, :, None]
    a = p / p.sum(axis=1, keepdims=True)
    a = a * jnp.transpose(dist, (1, 2, 0))                    # [Ndst, Nsrc, H]
    out = jnp.einsum('ijh,jhd->ihd', a, hf).reshape(N, H * D)
    return out


if __name__ == "__main__":
    N, in_dim, out_dim, num_heads = 60, 32, 16, 4
    negative_slope = 0.2

    key = jax.random.PRNGKey(0)
    ks = jax.random.split(key, 8)

    # inputs
    feat = jax.random.normal(ks[0], (N, in_dim), jnp.float32)
    # dense graph: random edges + self loops (every dst node has >= 1 incoming edge)
    adj = (jax.random.uniform(ks[1], (N, N)) < 0.5).astype(jnp.float32)
    adj = jnp.maximum(adj, jnp.eye(N, dtype=jnp.float32))
    dist = jnp.abs(jax.random.normal(ks[2], (num_heads, N, N), jnp.float32))

    # deterministic parameter init (shapes from Layer.__init__)
    W_torch = jax.random.normal(ks[3], (num_heads * out_dim, in_dim), jnp.float32) * 0.1
    W = W_torch.T                                                   # [in_dim, H*D]
    b = jax.random.normal(ks[4], (1, num_heads * out_dim), jnp.float32) * 0.1
    w_src = jax.random.normal(ks[5], (num_heads, out_dim), jnp.float32)   # w_att_src[0]
    w_dst = jax.random.normal(ks[6], (num_heads, out_dim), jnp.float32)   # w_att_dst[0]

    # adj / dist are streamed in the caller-provided dtype (no per-call conversion
    # pass).  In multi-layer AGAT they are reused across layers, so a bf16 copy should
    # be made ONCE upstream; for this single-use demo we stream them as f32 directly.
    out = gat_layer(feat, W, b, w_src, w_dst, adj, dist,
                    num_heads=num_heads, out_dim=out_dim,
                    negative_slope=negative_slope, tile_m=32)   # tile_m=32 -> 2-step grid
    out = jax.block_until_ready(out)

    ref = reference(feat, W, b, w_src, w_dst, adj, dist, negative_slope)
    assert out.shape == (N, num_heads * out_dim)
    # Tolerance reflects the mixed-precision policy: bf16 MXU operands (feat/W/h/q),
    # bf16 exp + dist multiply on v6e/v7x, and the approx reciprocal, all with f32
    # accumulation and an f32 softmax denominator.
    assert jnp.allclose(out, ref, atol=3e-2, rtol=3e-2), "mismatch vs reference"

    print("KERNEL_OK")
</pallas_src>

<mosaic_0001>
module attributes {stable_mosaic.version = 11 : i64} {
  func.func @prep_kernel(%arg0: i32, %arg1: memref<32x32xbf16, #tpu.memory_space<vmem>>, %arg2: memref<32x64xbf16, #tpu.memory_space<vmem>>, %arg3: memref<1x64xf32, #tpu.memory_space<vmem>>, %arg4: memref<64x8xf32, #tpu.memory_space<vmem>>, %arg5: memref<32x64xbf16, #tpu.memory_space<vmem>>, %arg6: memref<32x8xf32, #tpu.memory_space<vmem>>) attributes {dimension_semantics = [#tpu.dimension_semantics<parallel>], iteration_bounds = array<i64: 2>, scalar_prefetch = 0 : i64, scratch_operands = 0 : i64, tpu.core_type = #tpu.core_type<tc>, window_params = [{transform_indices = @transform_0, window_bounds = array<i64: 32, 32>}, {pipeline_mode = #tpu.pipeline_mode<synchronous>, transform_indices = @transform_1, window_bounds = array<i64: 32, 64>}, {pipeline_mode = #tpu.pipeline_mode<synchronous>, transform_indices = @transform_2, window_bounds = array<i64: 1, 64>}, {pipeline_mode = #tpu.pipeline_mode<synchronous>, transform_indices = @transform_3, window_bounds = array<i64: 64, 8>}, {transform_indices = @transform_4, window_bounds = array<i64: 32, 64>}, {transform_indices = @transform_5, window_bounds = array<i64: 32, 8>}]} {
    %c0 = arith.constant 0 : index
    %c0_0 = arith.constant 0 : index
    %0 = vector.load %arg1[%c0, %c0_0] : memref<32x32xbf16, #tpu.memory_space<vmem>>, vector<32x32xbf16>
    %c0_1 = arith.constant 0 : index
    %c0_2 = arith.constant 0 : index
    %1 = vector.load %arg2[%c0_1, %c0_2] : memref<32x64xbf16, #tpu.memory_space<vmem>>, vector<32x64xbf16>
    %cst = arith.constant dense<0.000000e+00> : vector<32x64xf32>
    %2 = tpu.matmul %0, %1, %cst {dimension_numbers = #tpu.dot_dimension_numbers<[1], [0], [0], [1], [0, 0, 1, 1], [], []>} : vector<32x32xbf16>, vector<32x64xbf16>, vector<32x64xf32> -> vector<32x64xf32>
    %c0_3 = arith.constant 0 : index
    %c0_4 = arith.constant 0 : index
    %3 = vector.load %arg3[%c0_3, %c0_4] : memref<1x64xf32, #tpu.memory_space<vmem>>, vector<1x64xf32>
    %4 = vector.broadcast %3 : vector<1x64xf32> to vector<32x64xf32>
    %5 = arith.addf %2, %4 : vector<32x64xf32>
    %cst_5 = arith.constant 2.000000e-01 : f32
    %6 = vector.broadcast %cst_5 : f32 to vector<32x64xf32>
    %7 = arith.mulf %6, %5 : vector<32x64xf32>
    %8 = arith.maximumf %5, %7 : vector<32x64xf32>
    %9 = arith.truncf %8 : vector<32x64xf32> to vector<32x64xbf16>
    %c0_6 = arith.constant 0 : index
    %c0_7 = arith.constant 0 : index
    %10 = vector.load %arg5[%c0_6, %c0_7] : memref<32x64xbf16, #tpu.memory_space<vmem>>, vector<32x64xbf16>
    tpu.vector_store %arg5[%c0_6, %c0_7], %9 {strides = array<i32>} : memref<32x64xbf16, #tpu.memory_space<vmem>>, vector<32x64xbf16>,
    %c0_8 = arith.constant 0 : index
    %c0_9 = arith.constant 0 : index
    %11 = vector.load %arg4[%c0_8, %c0_9] : memref<64x8xf32, #tpu.memory_space<vmem>>, vector<64x8xf32>
    %cst_10 = arith.constant dense<0.000000e+00> : vector<32x8xf32>
    %12 = tpu.matmul %8, %11, %cst_10 {dimension_numbers = #tpu.dot_dimension_numbers<[1], [0], [0], [1], [0, 0, 1, 1], [], []>} : vector<32x64xf32>, vector<64x8xf32>, vector<32x8xf32> -> vector<32x8xf32>
    %c0_11 = arith.constant 0 : index
    %c0_12 = arith.constant 0 : index
    %13 = vector.load %arg6[%c0_11, %c0_12] : memref<32x8xf32, #tpu.memory_space<vmem>>, vector<32x8xf32>
    tpu.vector_store %arg6[%c0_11, %c0_12], %12 {strides = array<i32>} : memref<32x8xf32, #tpu.memory_space<vmem>>, vector<32x8xf32>,
    return
  }
  func.func @transform_0(%arg0: i32) -> (i32, i32) {
    %c0_i32 = arith.constant 0 : i32
    %c0_i32_0 = arith.constant 0 : i32
    return %arg0, %c0_i32 : i32, i32
  }
  func.func @transform_1(%arg0: i32) -> (i32, i32) {
    %c0_i32 = arith.constant 0 : i32
    %c0_i32_0 = arith.constant 0 : i32
    %c0_i32_1 = arith.constant 0 : i32
    return %c0_i32, %c0_i32_0 : i32, i32
  }
  func.func @transform_2(%arg0: i32) -> (i32, i32) {
    %c0_i32 = arith.constant 0 : i32
    %c0_i32_0 = arith.constant 0 : i32
    %c0_i32_1 = arith.constant 0 : i32
    return %c0_i32, %c0_i32_0 : i32, i32
  }
  func.func @transform_3(%arg0: i32) -> (i32, i32) {
    %c0_i32 = arith.constant 0 : i32
    %c0_i32_0 = arith.constant 0 : i32
    %c0_i32_1 = arith.constant 0 : i32
    return %c0_i32, %c0_i32_0 : i32, i32
  }
  func.func @transform_4(%arg0: i32) -> (i32, i32) {
    %c0_i32 = arith.constant 0 : i32
    %c0_i32_0 = arith.constant 0 : i32
    return %arg0, %c0_i32 : i32, i32
  }
  func.func @transform_5(%arg0: i32) -> (i32, i32) {
    %c0_i32 = arith.constant 0 : i32
    %c0_i32_0 = arith.constant 0 : i32
    return %arg0, %c0_i32 : i32, i32
  }
}

</mosaic_0001>

<bundles_post_ra>
// kernel: tpu_custom_call.1
= control target key start
LH: loop header
LB: loop body
LE: loop exit
PB: predicated region body
PF: predicated region fallthrough
CT: control target
= control target key end

     0   :  { %11 = vsyncpa [#allocation3], 0  ;;  %s976_s0 = inlined_call_operand.vmem [shape: bf16[64,32], index: 0, kind: input, shape index: {}]   ;;  %s977_s1 = inlined_call_operand.vmem [shape: bf16[32,64], index: 1, kind: input, shape index: {}]   ;;  %s978_s2 = inlined_call_operand.vmem [shape: f32[1,64], index: 2, kind: input, shape index: {}]   ;;  %s979_s3 = inlined_call_operand.vmem [shape: f32[64,8], index: 3, kind: input, shape index: {}]   ;;  %s980_s4 = inlined_call_operand.hbm [shape: bf16[64,64], index: 4, kind: output, shape index: {0}]   ;;  %s981_s5 = inlined_call_operand.vmem [shape: f32[64,8], index: 5, kind: output, shape index: {1}]  }
   0x1   :  { %13 = vsyncpa [#allocation3 + $0x1], 0  ;;  %s822_s18 = smov 0   ;;  %s824_s19 = smov 0  }
   0x2   :  { %s826_s20 = smov 0   ;;  %s828_s21 = smov 0  }
   0x3 LB: > { %s843_s22 = sadd.s32 4294967295, %s787_s21   ;;  %s584_s23 = sadd.s32 4294967294, %s787_s21   ;;  %s787_s21 = sphi %s828_s21, %s987_s21   ;;  %s783_s20 = sphi %s826_s20, %s986_s20   ;;  %s779_s19 = sphi %s824_s19, %s985_s19   ;;  %s775_s18 = sphi %s822_s18, %s984_s18  }
   0x4   : > { %s847_s24 = sadd.s32 1, %s787_s21   ;;  %s115_s25 = sadd.s32 1, %s783_s20 }
   0x5   : > { %s112_s26 = ssub.s32 %s787_s21, %s847_s24  ;;  %p125_p0 = scmp.ne.s32.totalorder %s783_s20, %s779_s19 }
   0x6   : > { %p113_p1 = scmp.eq.s32.totalorder %s112_s26, 0  ;;  %p126_p2 = scmp.eq.s32.totalorder %s843_s22, 1 }
   0x7   : > { %p131_p3 = scmp.ne.s32.totalorder %s779_s19, %s775_s18  ;;  %p132_p4 = scmp.eq.s32.totalorder %s584_s23, 1 }
   0x8   : > { %s858_s27 = scalar_select %p113_p1, %s783_s20, %s115_s25  }
   0x9   : > { %p860_p5 = por %p126_p2, %p125_p0  ;;  %p864_p6 = por %p132_p4, %p131_p3 }
   0xa   : > { %p587_p7 = scmp.ge.s32.totalorder %s787_s21, 1  ;;  %p194_p8 = scmp.lt.s32.totalorder %s787_s21, 3 }
   0xc   : > { %p195_p9 = pnand %p587_p7, %p194_p8 }
   0xd   : > { %v721_v0 = vld [vmem:[%s977_s1] sm:$0xff] (!%p195_p9)   ;;  %s589_s7 = sshll.u32 (!%p195_p9), %s843_s22, 2  ;;  %v722_v1 = vld [vmem:[%s977_s1 + $0x8] sm:$0xff] (!%p195_p9)   ;;  %v365_v4 = vld [vmem:[%s979_s3 + $0x10] sm:$0xff] (!%p195_p9)  ;;  %vm278_vm0 = vcmask (!%p195_p9), 261120   ;;  %s217_s17 = sand.u32 (!%p195_p9), 1, %s779_s19  }
   0xe   : > { %198 = sbr.rel (%p195_p9) target bundleno = 465 (0x1d1), region = 36  ;;  %p228_p10 = scmp.lt.s32.totalorder (!%p195_p9), %s589_s7, 7  ;;  %634 = vmatprep.subr.bf16.mxu0 (!%p195_p9), %v721_v0  ;;  %v363_v2 = vld [vmem:[%s979_s3] sm:$0xff] (!%p195_p9)  ;;  %v364_v3 = vld [vmem:[%s979_s3 + $0x8] sm:$0xff] (!%p195_p9)  ;;  %v366_v6 = vld [vmem:[%s979_s3 + $0x18] sm:$0xff] (!%p195_p9)  ;;  %vm371_vm1 = vcmask (!%p195_p9), 523264  }
   0xf   : > { %635 = vmatpush3.bf16.msra.mxu0 (!%p195_p9), %v721_v0  ;;  %v664_v5 = vpack.c.bf16 (!%p195_p9), %v364_v3, %v363_v2  ;;  %v668_v7 = vpack.c.bf16 (!%p195_p9), %v366_v6, %v365_v4  ;;  %v367_v10 = vld [vmem:[%s979_s3 + $0x20] sm:$0xff] (!%p195_p9)  ;;  %v368_v11 = vld [vmem:[%s979_s3 + $0x28] sm:$0xff] (!%p195_p9)  ;;  %v369_v13 = vld [vmem:[%s979_s3 + $0x30] sm:$0xff] (!%p195_p9)  ;;  %vm358_vm2 = vcmask (!%p195_p9), 519168   ;;  %s617_s26 = sshll.u32 (!%p195_p9), %s843_s22, 8  ;;  %s931_s10 = scalar_lea.sflag (!%p195_p9), [#allocation3], %s217_s17 }
  0x10   : > { %636 = vmatprep.subr.bf16.mxu0 (!%p195_p9), %v722_v1  ;;  %v672_v12 = vpack.c.bf16 (!%p195_p9), %v368_v11, %v367_v10  ;;  %v370_v14 = vld [vmem:[%s979_s3 + $0x38] sm:$0xff] (!%p195_p9)  ;;  %v593_v16 = vld [vmem:[%s978_s2] ss:$0 sm:$0xff] (!%p195_p9)  ;;  %s925_s9 = scalar_lea.hbm (!%p195_p9), %s980_s4, %s617_s26  ;;  %s789_s22 = smov (!%p195_p9), [#allocation2]  }
  0x11   : > { %665 = vmatprep.subr.bf16.mxu1 (!%p195_p9), %v664_v5  ;;  %v676_v15 = vpack.c.bf16 (!%p195_p9), %v370_v14, %v369_v13  ;;  %s729_s12 = sshll.u32 (!%p195_p9), %s789_s22, 4  ;;  %s730_s12 = int_to_ptr.vmem [resolvable:$false] %s729_s12 }
  0x12   : > { %667 = vmatpush3.bf16.msra.mxu1 (!%p195_p9), %v664_v5  ;;  %s731_s13 = scalar_lea.vmem (!%p195_p9), %s730_s12, 512 }
  0x13   : > { %637 = vmatpush3.bf16.msra.mxu0 (!%p195_p9), %v722_v1  ;;  %669 = vmatprep.subr.bf16.mxu1 (!%p195_p9), %v668_v7 }
  0x15   : > { %s989_s7 = smov (!%p228_p10, %s589_s7), 7 }
  0x16   : > { %s590_s23 = sshll.u32 %s989_s7, 2  ;;  %671 = vmatpush3.bf16.msra.mxu1 %v668_v7 }
  0x17   : > { %s231_s30 = scalar_lea.vmem %s976_s0, %s590_s23  ;;  %673 = vmatprep.subr.bf16.mxu1 %v672_v12  ;;  %s588_s23 = sshll.u32 %s217_s17, 4 }
  0x18   : > { %v723_v8 = vld [vmem:[%s231_s30] sm:$0xff]   ;;  %v724_v9 = vld [vmem:[%s231_s30 + $0x8] sm:$0xff]   ;;  %s219_s25 = scalar_lea.vmem [#allocation2], %s588_s23 }
  0x19   : > { %638 = vmatprep.mubr.msk.bf16.mxu0 %vm278_vm0, %v723_v8  ;;  %s493_s30 = sshll.u32 %s219_s25, 4  ;;  %s927_s30 = int_to_ptr.vmem [resolvable:$true] %s493_s30 }
  0x1a   : > { %639 = vmatmul.mubr.msk.bf16.vlgmr.msra.gmra.mrb[0].mxu0 %vm278_vm0, %v724_v9  ;;  %675 = vmatpush3.bf16.msra.mxu1 %v672_v12  ;;  %s725_s11 = scalar_lea.vmem %s927_s30, 256  ;;  %p732_p0 = scmp.lt.s32.totalorder %s927_s30, %s730_s12 }
  0x1b   : > { %677 = vmatprep.subr.bf16.mxu1 %v676_v15  ;;  %p726_p11 = scmp.ne.s32.totalorder %s927_s30, %s725_s11  ;;  %p733_p1 = scmp.lt.s32.totalorder %s731_s13, %s725_s11 }
  0x1d   : > { %p727_p12 = pnand %p726_p11, %p860_p5  ;;  %p734_p2 = por %p733_p1, %p732_p0 }
  0x1e   : > { %679 = vmatpush3.bf16.msra.mxu1 %v676_v15 }
  0x1f   : > { %p728_p13 = pneg %p727_p12 }
  0x21   : > { %p735_p3 = pnand %p734_p2, %p728_p13 }
  0xed   : > { %v640_v17 = vpop.f32.mrb[0].mxu0 }
  0xee   : > { %v328_v18 = vadd.f32 %v640_v17, %v593_v16  ;;  %v319_v19 = vpop.f32.mrb[1].mxu0 }
  0xef   : > { %v320_v20 = vadd.f32 %v593_v16, %v319_v19  ;;  %v641_v21 = vpop.f32.mrb[2].mxu0 }
  0xf0   : > { %v336_v22 = vmul.f32 0.2, %v328_v18  ;;  %v331_v23 = vadd.f32 %v641_v21, %v593_v16  ;;  %v322_v24 = vpop.f32.mrb[3].mxu0 }
  0xf1   : > { %v334_v25 = vmul.f32 0.2, %v320_v20  ;;  %v323_v26 = vadd.f32 %v593_v16, %v322_v24 }
  0xf2   : > { %v340_v27 = vmax.f32 %v328_v18, %v336_v22  ;;  %v337_v28 = vmul.f32 0.2, %v331_v23 }
  0xf3   : > { %v335_v29 = vmul.f32 0.2, %v323_v26  ;;  %v338_v30 = vmax.f32 %v320_v20, %v334_v25 }
  0xf4   : > { %v615_v31 = vpack.c.bf16 %v340_v27, %v340_v27  ;;  %v341_v32 = vmax.f32 %v331_v23, %v337_v28 }
  0xf5   : > { %v339_v33 = vmax.f32 %v323_v26, %v335_v29  ;;  %v613_v34 = vpack.c.bf16 %v338_v30, %v338_v30  ;;  %658 = vmatprep.mubr.msk.f32.mxu1 %vm371_vm1, %v338_v30 }
  0xf6   : > { %361 = vst.msk [vmem:[%s219_s25 + $0x8] sm:$0xf] %vm358_vm2, %v615_v31  ;;  %v616_v35 = vpack.c.bf16 %v341_v32, %v341_v32 }
  0xf7   : > { %v614_v36 = vpack.c.bf16 %v339_v33, %v339_v33  ;;  %359 = vst.msk [vmem:[%s219_s25] sm:$0xf] %vm358_vm2, %v613_v34  ;;  %659 = vmatmul.mubr.msk.f32.vlgmr.msra.gmra.mrb[0].mxu1 %vm371_vm1, %v339_v33 }
  0xf8   : > { %362 = vst.msk [vmem:[%s219_s25 + $0xc] sm:$0xf] %vm358_vm2, %v616_v35  ;;  %661 = vmatprep.mubr.msk.f32.mxu1 %vm371_vm1, %v340_v27 }
  0xf9   : > { %360 = vst.msk [vmem:[%s219_s25 + $0x4] sm:$0xf] %vm358_vm2, %v614_v36 }
  0xfb   : > { %662 = vmatmul.mubr.msk.f32.gmra.mrb[2].mxu1 %vm371_vm1, %v341_v32 }
  0xfc   : > { %738 = shalt.err (!%p735_p3)
}
  0xfd   : > { %s739_s14 = scalar_lea.hbm %s925_s9, 256  ;;  %s743_s17 = scalar_lea.hbm %s980_s4, 512 }
  0xfe   : > { %p740_p4 = scmp.ne.s32.totalorder %s925_s9, %s739_s14  ;;  %p744_p9 = scmp.lt.u32.totalorder %s925_s9, %s980_s4 }
  0xff   : > { %p745_p10 = scmp.lt.u32.totalorder %s743_s17, %s739_s14  ;;  %p747_p12 = scmp.lt.u32.totalorder %s739_s14, %s925_s9 }
 0x100   : > { %p741_p7 = pnand %p740_p4, %p860_p5 }
 0x101   : > { %p746_p11 = por %p745_p10, %p744_p9 }
 0x102   : > { %p742_p8 = pneg %p741_p7 }
 0x103   : > { %p748_p13 = por %p747_p12, %p746_p11 }
 0x105   : > { %p749_p0 = pnand %p748_p13, %p742_p8 }
 0x107   : > { %752 = shalt.err (!%p749_p0)
}
 0x108   : > { %s790_s26 = smov 64   ;;  %s791_s6 = smov 4   ;;  %vm469_vm3 = vcmask 64512  }
 0x109   : > { %680 = dma.vmem_to_hbm [thread:$0]  (%p860_p5), %s927_s30, 256, %s925_s9, %s931_s10, %s790_s26, %s790_s26, %s791_s6  }
 0x10a   : > { %s592_s8 = sshll.u32 %s989_s7, 3 }
 0x10b   : > { %s238_s12 = scalar_lea.vmem %s981_s5, %s592_s8 }
 0x1ca   : > { %v660_v37 = vpop.f32.mrb[0].mxu1 }
 0x1cb   : > { %v450_v38 = vpop.f32.mrb[1].mxu1  ;;  %471 = vst.msk [vmem:[%s238_s12 + $0x8] sm:$0xff] %vm469_vm3, %v660_v37 }
 0x1cc   : > { %470 = vst.msk [vmem:[%s238_s12] sm:$0xff] %vm469_vm3, %v450_v38 }
 0x1ce   : > { %v663_v39 = vpop.f32.mrb[2].mxu1 }
 0x1cf   : > { %v460_v40 = vpop.f32.mrb[3].mxu1  ;;  %473 = vst.msk [vmem:[%s238_s12 + $0x18] sm:$0xff] %vm469_vm3, %v663_v39 }
 0x1d0   : > { %472 = vst.msk [vmem:[%s238_s12 + $0x10] sm:$0xff] %vm469_vm3, %v460_v40 }
 0x1d1 PF: > { %p686_p1 = scmp.ge.s32.totalorder %s787_s21, 2  ;;  %s512_s28 = sand.u32 1, %s775_s18  }
 0x1d2   : > { %s513_s7 = scalar_lea.sflag [#allocation3], %s512_s28 }
 0x1d3   : > { %p683_p5 = pnand %p686_p1, %p864_p6 }
 0x1d5   : > { %770 = dma.done.wait (!%p683_p5), %s513_s7, 256  }
 0x1d6   : > { %772 = vsyncadd (!%p683_p5), %s513_s7, 4294967040  ;;  %p16_p2 = scmp.ge.s32.totalorder %s847_s24, 4   ;;  %s984_s18 = smov %s779_s19 }
 0x1d7   : > { %s985_s19 = smov %s783_s20  ;;  %s986_s20 = smov %s858_s27 }
 0x1d8   : > { %s987_s21 = smov %s847_s24  ;;  %18 = sbr.rel (!%p16_p2) target bundleno = 3 (0x3), region = 83 }
 0x1df   :  { %526 = vsyncpa [#allocation3], 1 }
 0x1e0   :  { %528 = vsyncpa [#allocation3 + $0x1], 1 }

</bundles_post_ra>
